<compile_context>
chip_gen: v7x
topology: tpu7x:2x2x1
jax: 0.10.0
libtpu: 0.0.40
codegen_flags: <defaults>
</compile_context>

<pallas_src>
import jax
import jax.numpy as jnp
from jax import lax
from jax.experimental import pallas as pl
from jax.experimental.pallas import tpu as pltpu

EMBED_DIM = 8
HIDDEN_DIM = 32
LEAKY_SLOPE = 0.01  # torch.nn.LeakyReLU default negative_slope


def _leaky_relu(x):
    return jnp.where(x > 0, x, LEAKY_SLOPE * x)


def flow_kernel(state_ref, idx_ref,
                w1s_ref, w1e_ref,
                w2_ref, b2_ref,
                w3_ref, b3_ref,
                out_ref):
    # Batch lives on the lane (last) axis everywhere in this kernel.
    state_t = state_ref[...]                      # (S, TB)  f32
    idx = idx_ref[...]                            # (1, TB)  i32
    tb = state_t.shape[1]
    n_embed = w1e_ref.shape[1]

    # Rebuild one-hot(argmax) from the int index: pure VPU compare, no
    # cross-lane reductions in the kernel.
    iota = lax.broadcasted_iota(jnp.int32, (n_embed, tb), 0)
    one_hot = (iota == idx).astype(jnp.float32)   # (n_embed, TB)

    # FFL1 on cat([state, emb]) in transposed form; b1 is folded into w1e_ref.
    h1 = (jnp.dot(w1s_ref[...], state_t, preferred_element_type=jnp.float32)
          + jnp.dot(w1e_ref[...], one_hot, preferred_element_type=jnp.float32))
    h1 = _leaky_relu(h1)                          # (H, TB)

    h2 = jnp.dot(w2_ref[...], h1, preferred_element_type=jnp.float32) + b2_ref[...]
    h2 = _leaky_relu(h2)                          # (H, TB)

    # Lane-dense (1, TB) output slab -> unmasked stores.
    out = jnp.dot(w3_ref[...], h2, preferred_element_type=jnp.float32) + b3_ref[...]
    out_ref[...] = out.astype(out_ref.dtype)


def flow_function_forward(state, action, folded, *,
                          tile_b=4096,
                          vmem_budget_bytes=24 * 1024 * 1024):
    """state: (B, state_dim) f32; action: (B, n_embed) one-hot-ish f32."""
    B, S = state.shape
    H, n_embed = folded["w1eT"].shape
    LANE = 128

    def rup(x, m):
        return ((x + m - 1) // m) * m

    # argmax in the wrapper (tiny XLA op). Matches torch.argmax first-max
    # tie-breaking for well-formed (non-NaN) inputs, e.g. one-hot actions.
    idx = jnp.argmax(action, axis=1).astype(jnp.int32).reshape(1, B)   # (1, B)
    state_t = state.T                                                  # (S, B)

    # Batch tile width (batch is on the lane axis) derived from a VMEM budget
    # that is safe on v5e/v6e (128 MiB phys) and v7x (64 MiB phys):
    #   2x double-buffered state/idx/out tiles (sublane-padded) + the
    #   one_hot/h1/h2 intermediates, per batch column, in f32.
    s_pad = rup(S, 8)
    ne_pad = rup(n_embed, 8)
    bytes_per_col = 4 * (2 * (s_pad + 8 + 8) + ne_pad + 2 * H)
    fixed_bytes = 512 * 1024                      # resident weights + slack
    tb_cap = max(LANE,
                 ((vmem_budget_bytes - fixed_bytes) // bytes_per_col)
                 // LANE * LANE)
    tb = max(LANE, (min(tile_b, tb_cap) // LANE) * LANE)

    if B <= tb:
        # Single grid step: full-extent lane block, no padding copy of state.
        tb = B
        b_pad = B
    else:
        # Keep >= 2 grid steps so "parallel" can use both v7x TensorCores.
        tb = min(tb, rup(pl.cdiv(B, 2), LANE))
        b_pad = pl.cdiv(B, tb) * tb
        if b_pad != B:
            # Padded columns use zero state / idx=0 (valid) and are sliced off.
            state_t = jnp.pad(state_t, ((0, 0), (0, b_pad - B)))
            idx = jnp.pad(idx, ((0, 0), (0, b_pad - B)))

    def resident(arr):  # full-array block, constant index_map -> VMEM-resident
        return pl.BlockSpec(arr.shape, lambda i: (0, 0))

    out_t = pl.pallas_call(
        flow_kernel,
        out_shape=jax.ShapeDtypeStruct((1, b_pad), jnp.float32),
        grid=(b_pad // tb,),
        in_specs=[
            pl.BlockSpec((S, tb), lambda i: (0, i)),   # state tile (pipelined)
            pl.BlockSpec((1, tb), lambda i: (0, i)),   # action indices
            resident(folded["w1sT"]),
            resident(folded["w1eT"]),
            resident(folded["w2T"]),
            resident(folded["b2T"]),
            resident(folded["w3T"]),
            resident(folded["b3"]),
        ],
        out_specs=pl.BlockSpec((1, tb), lambda i: (0, i)),
        compiler_params=pltpu.CompilerParams(
            dimension_semantics=("parallel",),
            vmem_limit_bytes=32 * 1024 * 1024),
    )(state_t, idx,
      folded["w1sT"], folded["w1eT"], folded["w2T"],
      folded["b2T"], folded["w3T"], folded["b3"])

    return out_t[:, :B].T                           # back to (B, 1)


def init_params(key, state_dim, n_embed):
    """Deterministic synthetic parameters, stored as (in, out) matrices."""
    ks = jax.random.split(key, 8)

    def u(k, shape, scale=0.1):
        return (jax.random.uniform(k, shape, jnp.float32) - 0.5) * 2 * scale

    return {
        "embed_w":  u(ks[0], (n_embed, EMBED_DIM), 1.0),
        # FFL1 weight split by concat order: torch.cat([state, emb], 1).
        "w1_state": u(ks[1], (state_dim, HIDDEN_DIM)),
        "w1_embed": u(ks[2], (EMBED_DIM, HIDDEN_DIM)),
        "b1":       u(ks[3], (1, HIDDEN_DIM)),
        "w2":       u(ks[4], (HIDDEN_DIM, HIDDEN_DIM)),
        "b2":       u(ks[5], (1, HIDDEN_DIM)),
        "w3":       u(ks[6], (HIDDEN_DIM, 1)),
        "b3":       u(ks[7], (1, 1)),
    }


def fold_params(params):
    """One-time fold into the transposed, batch-on-lanes layout.

    * embedding gather + its FFL1 slice -> one (H, n_embed) matrix
    * b1 folded into that matrix (each one-hot row sums to exactly 1)
    """
    w1e_folded = jnp.dot(params["embed_w"], params["w1_embed"])   # (n_embed, H)
    return {
        "w1sT": params["w1_state"].T,                    # (H, S)
        "w1eT": w1e_folded.T + params["b1"].T,           # (H, n_embed), b1 in
        "w2T":  params["w2"].T,                          # (H, H)
        "b2T":  params["b2"].T,                          # (H, 1)
        "w3T":  params["w3"].T,                          # (1, H)
        "b3":   params["b3"],                            # (1, 1)
    }


def reference_forward(state, action, params):
    """Plain-JAX reference mirroring the PyTorch forward exactly."""
    idx = jnp.argmax(action, axis=1)
    emb = params["embed_w"][idx]
    h1 = _leaky_relu(state @ params["w1_state"] + emb @ params["w1_embed"]
                     + params["b1"])
    h2 = _leaky_relu(h1 @ params["w2"] + params["b2"])
    return h2 @ params["w3"] + params["b3"]


if __name__ == "__main__":
    B, STATE_DIM, N_EMBED = 8, 4, 16

    key = jax.random.PRNGKey(0)
    k_state, k_act, k_params = jax.random.split(key, 3)

    state = jax.random.normal(k_state, (B, STATE_DIM), jnp.float32)
    act_ids = jax.random.randint(k_act, (B,), 0, N_EMBED)
    action = jax.nn.one_hot(act_ids, N_EMBED, dtype=jnp.float32)

    params = init_params(k_params, STATE_DIM, N_EMBED)
    folded = fold_params(params)

    out = flow_function_forward(state, action, folded)
    out = jax.block_until_ready(out)

    ref = reference_forward(state, action, params)
    assert out.shape == (B, 1)
    assert jnp.allclose(out, ref, atol=1e-5, rtol=1e-5)

    print("KERNEL_OK")
</pallas_src>

<mosaic_0001>
module attributes {stable_mosaic.version = 11 : i64} {
  func.func @flow_kernel(%arg0: i32, %arg1: memref<4x8xf32, #tpu.memory_space<vmem>>, %arg2: memref<1x8xi32, #tpu.memory_space<vmem>>, %arg3: memref<32x4xf32, #tpu.memory_space<vmem>>, %arg4: memref<32x16xf32, #tpu.memory_space<vmem>>, %arg5: memref<32x32xf32, #tpu.memory_space<vmem>>, %arg6: memref<32x1xf32, #tpu.memory_space<vmem>>, %arg7: memref<1x32xf32, #tpu.memory_space<vmem>>, %arg8: memref<1x1xf32, #tpu.memory_space<vmem>>, %arg9: memref<1x8xf32, #tpu.memory_space<vmem>>) attributes {dimension_semantics = [#tpu.dimension_semantics<parallel>], iteration_bounds = array<i64: 1>, scalar_prefetch = 0 : i64, scratch_operands = 0 : i64, tpu.core_type = #tpu.core_type<tc>, window_params = [{transform_indices = @transform_0, window_bounds = array<i64: 4, 8>}, {transform_indices = @transform_1, window_bounds = array<i64: 1, 8>}, {pipeline_mode = #tpu.pipeline_mode<synchronous>, transform_indices = @transform_2, window_bounds = array<i64: 32, 4>}, {pipeline_mode = #tpu.pipeline_mode<synchronous>, transform_indices = @transform_3, window_bounds = array<i64: 32, 16>}, {pipeline_mode = #tpu.pipeline_mode<synchronous>, transform_indices = @transform_4, window_bounds = array<i64: 32, 32>}, {pipeline_mode = #tpu.pipeline_mode<synchronous>, transform_indices = @transform_5, window_bounds = array<i64: 32, 1>}, {pipeline_mode = #tpu.pipeline_mode<synchronous>, transform_indices = @transform_6, window_bounds = array<i64: 1, 32>}, {pipeline_mode = #tpu.pipeline_mode<synchronous>, transform_indices = @transform_7, window_bounds = array<i64: 1, 1>}, {transform_indices = @transform_8, window_bounds = array<i64: 1, 8>}]} {
    %c0 = arith.constant 0 : index
    %c0_0 = arith.constant 0 : index
    %0 = vector.load %arg1[%c0, %c0_0] : memref<4x8xf32, #tpu.memory_space<vmem>>, vector<4x8xf32>
    %c0_1 = arith.constant 0 : index
    %c0_2 = arith.constant 0 : index
    %1 = vector.load %arg2[%c0_1, %c0_2] : memref<1x8xi32, #tpu.memory_space<vmem>>, vector<1x8xi32>
    %2 = tpu.iota {dimensions = array<i32: 0>} : vector<16x8xi32>
    %3 = vector.broadcast %1 : vector<1x8xi32> to vector<16x8xi32>
    %4 = arith.cmpi eq, %2, %3 : vector<16x8xi32>
    %5 = arith.extui %4 : vector<16x8xi1> to vector<16x8xi32>
    %6 = arith.sitofp %5 : vector<16x8xi32> to vector<16x8xf32>
    %c0_3 = arith.constant 0 : index
    %c0_4 = arith.constant 0 : index
    %7 = vector.load %arg3[%c0_3, %c0_4] : memref<32x4xf32, #tpu.memory_space<vmem>>, vector<32x4xf32>
    %cst = arith.constant dense<0.000000e+00> : vector<32x8xf32>
    %8 = tpu.matmul %7, %0, %cst {dimension_numbers = #tpu.dot_dimension_numbers<[1], [0], [0], [1], [0, 0, 1, 1], [], []>} : vector<32x4xf32>, vector<4x8xf32>, vector<32x8xf32> -> vector<32x8xf32>
    %c0_5 = arith.constant 0 : index
    %c0_6 = arith.constant 0 : index
    %9 = vector.load %arg4[%c0_5, %c0_6] : memref<32x16xf32, #tpu.memory_space<vmem>>, vector<32x16xf32>
    %cst_7 = arith.constant dense<0.000000e+00> : vector<32x8xf32>
    %10 = tpu.matmul %9, %6, %cst_7 {dimension_numbers = #tpu.dot_dimension_numbers<[1], [0], [0], [1], [0, 0, 1, 1], [], []>} : vector<32x16xf32>, vector<16x8xf32>, vector<32x8xf32> -> vector<32x8xf32>
    %11 = arith.addf %8, %10 : vector<32x8xf32>
    %cst_8 = arith.constant 0.000000e+00 : f32
    %12 = vector.broadcast %cst_8 : f32 to vector<32x8xf32>
    %13 = arith.cmpf ogt, %11, %12 : vector<32x8xf32>
    %cst_9 = arith.constant 0.00999999977 : f32
    %14 = vector.broadcast %cst_9 : f32 to vector<32x8xf32>
    %15 = arith.mulf %14, %11 : vector<32x8xf32>
    %16 = arith.select %13, %11, %15 : vector<32x8xi1>, vector<32x8xf32>
    %c0_10 = arith.constant 0 : index
    %c0_11 = arith.constant 0 : index
    %17 = vector.load %arg5[%c0_10, %c0_11] : memref<32x32xf32, #tpu.memory_space<vmem>>, vector<32x32xf32>
    %cst_12 = arith.constant dense<0.000000e+00> : vector<32x8xf32>
    %18 = tpu.matmul %17, %16, %cst_12 {dimension_numbers = #tpu.dot_dimension_numbers<[1], [0], [0], [1], [0, 0, 1, 1], [], []>} : vector<32x32xf32>, vector<32x8xf32>, vector<32x8xf32> -> vector<32x8xf32>
    %c0_13 = arith.constant 0 : index
    %c0_14 = arith.constant 0 : index
    %19 = vector.load %arg6[%c0_13, %c0_14] : memref<32x1xf32, #tpu.memory_space<vmem>>, vector<32x1xf32>
    %20 = vector.broadcast %19 : vector<32x1xf32> to vector<32x8xf32>
    %21 = arith.addf %18, %20 : vector<32x8xf32>
    %cst_15 = arith.constant 0.000000e+00 : f32
    %22 = vector.broadcast %cst_15 : f32 to vector<32x8xf32>
    %23 = arith.cmpf ogt, %21, %22 : vector<32x8xf32>
    %cst_16 = arith.constant 0.00999999977 : f32
    %24 = vector.broadcast %cst_16 : f32 to vector<32x8xf32>
    %25 = arith.mulf %24, %21 : vector<32x8xf32>
    %26 = arith.select %23, %21, %25 : vector<32x8xi1>, vector<32x8xf32>
    %c0_17 = arith.constant 0 : index
    %c0_18 = arith.constant 0 : index
    %27 = vector.load %arg7[%c0_17, %c0_18] : memref<1x32xf32, #tpu.memory_space<vmem>>, vector<1x32xf32>
    %cst_19 = arith.constant dense<0.000000e+00> : vector<1x8xf32>
    %28 = tpu.matmul %27, %26, %cst_19 {dimension_numbers = #tpu.dot_dimension_numbers<[1], [0], [0], [1], [0, 0, 1, 1], [], []>} : vector<1x32xf32>, vector<32x8xf32>, vector<1x8xf32> -> vector<1x8xf32>
    %c0_20 = arith.constant 0 : index
    %c0_21 = arith.constant 0 : index
    %29 = vector.load %arg8[%c0_20, %c0_21] : memref<1x1xf32, #tpu.memory_space<vmem>>, vector<1x1xf32>
    %30 = vector.broadcast %29 : vector<1x1xf32> to vector<1x8xf32>
    %31 = arith.addf %28, %30 : vector<1x8xf32>
    %c0_22 = arith.constant 0 : index
    %c0_23 = arith.constant 0 : index
    %32 = vector.load %arg9[%c0_22, %c0_23] : memref<1x8xf32, #tpu.memory_space<vmem>>, vector<1x8xf32>
    tpu.vector_store %arg9[%c0_22, %c0_23], %31 {strides = array<i32>} : memref<1x8xf32, #tpu.memory_space<vmem>>, vector<1x8xf32>,
    return
  }
  func.func @transform_0(%arg0: i32) -> (i32, i32) {
    %c0_i32 = arith.constant 0 : i32
    %c0_i32_0 = arith.constant 0 : i32
    return %c0_i32, %arg0 : i32, i32
  }
  func.func @transform_1(%arg0: i32) -> (i32, i32) {
    %c0_i32 = arith.constant 0 : i32
    %c0_i32_0 = arith.constant 0 : i32
    return %c0_i32, %arg0 : i32, i32
  }
  func.func @transform_2(%arg0: i32) -> (i32, i32) {
    %c0_i32 = arith.constant 0 : i32
    %c0_i32_0 = arith.constant 0 : i32
    %c0_i32_1 = arith.constant 0 : i32
    return %c0_i32, %c0_i32_0 : i32, i32
  }
  func.func @transform_3(%arg0: i32) -> (i32, i32) {
    %c0_i32 = arith.constant 0 : i32
    %c0_i32_0 = arith.constant 0 : i32
    %c0_i32_1 = arith.constant 0 : i32
    return %c0_i32, %c0_i32_0 : i32, i32
  }
  func.func @transform_4(%arg0: i32) -> (i32, i32) {
    %c0_i32 = arith.constant 0 : i32
    %c0_i32_0 = arith.constant 0 : i32
    %c0_i32_1 = arith.constant 0 : i32
    return %c0_i32, %c0_i32_0 : i32, i32
  }
  func.func @transform_5(%arg0: i32) -> (i32, i32) {
    %c0_i32 = arith.constant 0 : i32
    %c0_i32_0 = arith.constant 0 : i32
    %c0_i32_1 = arith.constant 0 : i32
    return %c0_i32, %c0_i32_0 : i32, i32
  }
  func.func @transform_6(%arg0: i32) -> (i32, i32) {
    %c0_i32 = arith.constant 0 : i32
    %c0_i32_0 = arith.constant 0 : i32
    %c0_i32_1 = arith.constant 0 : i32
    return %c0_i32, %c0_i32_0 : i32, i32
  }
  func.func @transform_7(%arg0: i32) -> (i32, i32) {
    %c0_i32 = arith.constant 0 : i32
    %c0_i32_0 = arith.constant 0 : i32
    %c0_i32_1 = arith.constant 0 : i32
    return %c0_i32, %c0_i32_0 : i32, i32
  }
  func.func @transform_8(%arg0: i32) -> (i32, i32) {
    %c0_i32 = arith.constant 0 : i32
    %c0_i32_0 = arith.constant 0 : i32
    return %c0_i32, %arg0 : i32, i32
  }
}

</mosaic_0001>

<bundles_post_ra>
// kernel: tpu_custom_call.1
= control target key start
LH: loop header
LB: loop body
LE: loop exit
PB: predicated region body
PF: predicated region fallthrough
CT: control target
= control target key end

     0   :  { %s782_s0 = inlined_call_operand.vmem [shape: f32[4,8], index: 0, kind: input, shape index: {}]   ;;  %s783_s1 = inlined_call_operand.vmem [shape: s32[1,8], index: 1, kind: input, shape index: {}]   ;;  %s784_s2 = inlined_call_operand.vmem [shape: f32[32,4], index: 2, kind: input, shape index: {}]   ;;  %s785_s3 = inlined_call_operand.vmem [shape: f32[32,16], index: 3, kind: input, shape index: {}]   ;;  %s786_s4 = inlined_call_operand.vmem [shape: f32[32,32], index: 4, kind: input, shape index: {}]   ;;  %s787_s5 = inlined_call_operand.vmem [shape: f32[32,1], index: 5, kind: input, shape index: {}]   ;;  %s788_s6 = inlined_call_operand.vmem [shape: f32[1,32], index: 6, kind: input, shape index: {}]   ;;  %s789_s7 = inlined_call_operand.<no memory space> [shape: f32[1,1], index: 7, kind: input, shape index: {}]   ;;  %s790_s8 = inlined_call_operand.hbm [shape: f32[1,8], index: 8, kind: output, shape index: {}]  }
   0x1   :  { %v13_v0 = vstv %s789_s7 }
   0x2   :  { %14 = vst [vmem:[#allocation2] sm:$0x1] %v13_v0 }
   0x3   :  { %v34_v1 = vlaneseq  ;;  %v51_v2 = vld [vmem:[%s785_s3] sm:$0xff]  ;;  %vm55_vm0 = vcmask 130048  }
   0x4   :  { %v505_v3 = vld [vmem:[%s783_s1] ss:$0 sm:$0xff]  ;;  %552 = vmatprep.mubr.msk.f32.mxu0 %vm55_vm0, %v51_v2 }
   0x5   :  { %v706_v4 = vshrl.u32 %v34_v1, 7 }
   0x6   :  { %15 = vsyncpa [#allocation4], 0  ;;  %v32_v6 = vld [vmem:[%s782_s0] sm:$0xf]  ;;  %vm166_vm4 = vcmask 1043456   ;;  %v52_v8 = vld [vmem:[%s785_s3 + $0x8] sm:$0xff] }
   0x7   :  { %v36_v5 = vadd.s32 8, %v706_v4  ;;  %vm41_vm1 = vcmp.eq.s32.totalorder %v706_v4, %v505_v3  ;;  %v645_v7 = vmov 1.0|1.0   ;;  %v53_v9 = vld [vmem:[%s785_s3 + $0x10] sm:$0xff]  ;;  %v54_v10 = vld [vmem:[%s785_s3 + $0x18] sm:$0xff]  ;;  %v47_v11 = vld [vmem:[%s784_s2] sm:$0xff] }
   0x8   :  { %vm153_vm5 = vcmask 31744   ;;  %v48_v12 = vld [vmem:[%s784_s2 + $0x8] sm:$0xff]  ;;  %v49_v13 = vld [vmem:[%s784_s2 + $0x10] sm:$0xff]  ;;  %v50_v14 = vld [vmem:[%s784_s2 + $0x18] sm:$0xff]  ;;  %vm295_vm6 = vcmask 261120   ;;  %v646_v18 = vmov 0  }
   0x9   :  { %vm42_vm2 = vcmp.eq.s32.totalorder %v36_v5, %v505_v3  ;;  %v267_v15 = vld [vmem:[%s786_s4] sm:$0xff]  ;;  %v273_v17 = vld [vmem:[%s787_s5 + $0x10] sm:$0xff]  ;;  %619 = vset.pattern.permute.xlu0 %v646_v18  ;;  %620 = vset.pattern.permute.xlu1 %v646_v18  ;;  %v272_v19 = vld [vmem:[%s787_s5 + $0x8] sm:$0xff]  ;;  %v647_v39 = vmov 0.0|0.0   ;;  %vm648_vm11 = vmmov 0   ;;  %v649_v40 = vmov 0.0  }
   0xa   :  { %vm591_vm3 = vmpackc.low %vm42_vm2, %vm41_vm1  ;;  %574 = vmatprep.mubr.msk.f32.mxu1 %vm295_vm6, %v267_v15  ;;  %v271_v16 = vld [vmem:[%s787_s5] sm:$0xff]  ;;  %287 = vperm.xlu1 %620, %v273_v17   ;;  %v274_v20 = vld [vmem:[%s787_s5 + $0x18] sm:$0xff]  ;;  %v414_v0 = vsub.s32 0, %v706_v4  ;;  %s650_s14 = smov [#allocation3]  }
   0xb   :  { %592 = vmatprep.subr.msk.bf16.mxu0 %vm591_vm3, %v645_v7  ;;  %277 = vperm.xlu0 %619, %v271_v16   ;;  %v406_v21 = vld [vmem:[#allocation2] sm:$0x1]  ;;  %v268_v36 = vld [vmem:[%s786_s4 + $0x8] sm:$0xff]  ;;  %v269_v37 = vld [vmem:[%s786_s4 + $0x10] sm:$0xff]  ;;  %s497_s15 = sshll.u32 %s650_s14, 4  ;;  %s498_s15 = int_to_ptr.vmem [resolvable:$true] %s497_s15 }
   0xc   :  { %594 = vmatpush3.bf16.msk.msra.mxu0 %vm591_vm3, %v645_v7  ;;  %v270_v38 = vld [vmem:[%s786_s4 + $0x18] sm:$0xff]  ;;  %v405_v63 = vld [vmem:[%s788_s6] sm:$0x1]  ;;  %s621_s0 = scalar_lea.vmem %s498_s15, 16  ;;  %s625_s16 = scalar_lea.vmem %s498_s15, 32 }
   0xd   :  { %558 = vmatprep.subr.msk.mxu0 %vm166_vm4, %v32_v6  ;;  %p622_p0 = scmp.ne.s32.totalorder %s498_s15, %s621_s0  ;;  %p626_p1 = scmp.lt.s32.totalorder %s498_s15, %s498_s15 }
   0xe   :  { %292 = vperm.xlu1 %620, %v274_v20   ;;  %p627_p2 = scmp.lt.s32.totalorder %s625_s16, %s621_s0 }
   0xf   :  { %553 = vmatmul.mubr.msk.f32.vlgmr.msra.gmra.mrb[0].mxu0 %vm55_vm0, %v52_v8  ;;  %282 = vperm.xlu0 %619, %v272_v19  }
  0x10   :  { %559 = vmatpush3.msk.msra.mxu0 %vm166_vm4, %v32_v6  ;;  %555 = vmatprep.mubr.msk.f32.mxu0 %vm55_vm0, %v53_v9  ;;  %p628_p3 = por %p627_p2, %p626_p1 }
  0x12   :  { %p629_p4 = pnand %p628_p3, %p622_p0 }
  0x13   :  { %556 = vmatmul.mubr.msk.f32.gmra.mrb[2].mxu0 %vm55_vm0, %v54_v10  ;;  %409 = vperm.xlu0 %619, %v406_v21   ;;  %vm489_vm0 = vcmask 57344  }
  0x14   :  { %560 = vmatprep.mubr.msk.f32.mxu0 %vm153_vm5, %v47_v11 }
  0x17   :  { %561 = vmatmul.mubr.msk.f32.vlgmr.msra.gmra.mrb[0].mxu0 %vm153_vm5, %v48_v12 }
  0x18   :  { %563 = vmatprep.mubr.msk.f32.mxu0 %vm153_vm5, %v49_v13 }
  0x1b   :  { %564 = vmatmul.mubr.msk.f32.gmra.mrb[2].mxu0 %vm153_vm5, %v50_v14 }
  0x89   :  { %v288_v42 = vpop.permute.xlu1 %287 }
  0x8a   :  { %v278_v41 = vpop.permute.xlu0 %277 }
  0x8d   :  { %v293_v49 = vpop.permute.xlu1 %292 }
  0x8e   :  { %v283_v43 = vpop.permute.xlu0 %282 }
  0x92   :  { %v410_v1 = vpop.permute.xlu0 %409 }
  0x93   :  { %v415_v2 = vrot.slane %v410_v1, %v414_v0 }
  0xea   :  { %v562_v22 = vpop.f32.mrb[0].mxu0 }
  0xeb   :  { %vm256_vm7 = vcmp.gt.f32.partialorder %v562_v22, 0.0  ;;  %v260_v23 = vmul.f32 0.01, %v562_v22  ;;  %v236_v24 = vpop.f32.mrb[1].mxu0 }
  0xec   :  { %vm255_vm8 = vcmp.gt.f32.partialorder %v236_v24, 0.0  ;;  %v259_v25 = vmul.f32 0.01, %v236_v24 }
  0xed   :  { %v264_v26 = vsel %vm256_vm7, %v562_v22, %v260_v23 }
  0xee   :  { %v565_v27 = vpop.f32.mrb[2].mxu0  ;;  %v263_v28 = vsel %vm255_vm8, %v236_v24, %v259_v25 }
  0xef   :  { %vm258_vm9 = vcmp.gt.f32.partialorder %v565_v27, 0.0  ;;  %v262_v29 = vmul.f32 0.01, %v565_v27  ;;  %v246_v30 = vpop.f32.mrb[3].mxu0  ;;  %v595_v31 = vpack.c.bf16 %v264_v26, %v263_v28 }
  0xf0   :  { %vm257_vm10 = vcmp.gt.f32.partialorder %v246_v30, 0.0  ;;  %v261_v32 = vmul.f32 0.01, %v246_v30 }
  0xf1   :  { %v266_v33 = vsel %vm258_vm9, %v565_v27, %v262_v29  ;;  %596 = vmatprep.subr.bf16.mxu1 %v595_v31 }
  0xf2   :  { %v265_v34 = vsel %vm257_vm10, %v246_v30, %v261_v32  ;;  %598 = vmatpush3.bf16.msra.mxu1 %v595_v31 }
  0xf3   :  { %v599_v35 = vpack.c.bf16 %v266_v33, %v265_v34 }
  0xf5   :  { %600 = vmatprep.subr.bf16.mxu1 %v599_v35 }
  0xf6   :  { %602 = vmatpush3.bf16.msra.mxu1 %v599_v35 }
  0xf7   :  { %603 = vmatprep.subr.bf16.mxu1 %v647_v39 }
  0xf9   :  { %575 = vmatmul.mubr.msk.f32.vlgmr.msra.gmra.mrb[0].mxu1 %vm295_vm6, %v268_v36 }
  0xfa   :  { %577 = vmatprep.mubr.msk.f32.mxu1 %vm295_vm6, %v269_v37 }
  0xfd   :  { %578 = vmatmul.mubr.msk.f32.gmra.mrb[2].mxu1 %vm295_vm6, %v270_v38 }
  0xfe   :  { %588 = vmatprep.mubr.msk.f32.mxu1 %vm648_vm11, %v649_v40 }
 0x1cc   :  { %v576_v44 = vpop.f32.mrb[0].mxu1 }
 0x1cd   :  { %v380_v45 = vadd.f32 %v576_v44, %v283_v43  ;;  %v374_v46 = vpop.f32.mrb[1].mxu1 }
 0x1ce   :  { %v375_v47 = vadd.f32 %v374_v46, %v278_v41 }
 0x1cf   :  { %vm394_vm12 = vcmp.gt.f32.partialorder %v380_v45, 0.0  ;;  %v398_v48 = vmul.f32 0.01, %v380_v45 }
 0x1d0   :  { %vm393_vm13 = vcmp.gt.f32.partialorder %v375_v47, 0.0  ;;  %v397_v50 = vmul.f32 0.01, %v375_v47  ;;  %v579_v51 = vpop.f32.mrb[2].mxu1 }
 0x1d1   :  { %v402_v52 = vsel %vm394_vm12, %v380_v45, %v398_v48  ;;  %v390_v53 = vadd.f32 %v579_v51, %v293_v49  ;;  %v384_v54 = vpop.f32.mrb[3].mxu1 }
 0x1d2   :  { %v401_v55 = vsel %vm393_vm13, %v375_v47, %v397_v50  ;;  %v385_v56 = vadd.f32 %v384_v54, %v288_v42 }
 0x1d3   :  { %v604_v57 = vpack.c.bf16 %v402_v52, %v401_v55  ;;  %vm396_vm14 = vcmp.gt.f32.partialorder %v390_v53, 0.0  ;;  %v400_v58 = vmul.f32 0.01, %v390_v53 }
 0x1d4   :  { %vm395_vm15 = vcmp.gt.f32.partialorder %v385_v56, 0.0  ;;  %v399_v59 = vmul.f32 0.01, %v385_v56 }
 0x1d5   :  { %v404_v60 = vsel %vm396_vm14, %v390_v53, %v400_v58  ;;  %605 = vmatpush3.bf16.msra.mxu1 %v604_v57 }
 0x1d6   :  { %v403_v61 = vsel %vm395_vm15, %v385_v56, %v399_v59  ;;  %606 = vmatprep.subr.bf16.mxu1 %v647_v39 }
 0x1d7   :  { %v607_v62 = vpack.c.bf16 %v404_v60, %v403_v61 }
 0x1d9   :  { %608 = vmatpush3.bf16.msra.mxu1 %v607_v62 }
 0x1dc   :  { %589 = vmatmul.mubr.msk.f32.vlgmr.msra.gmra.mrb[4].mxu1 %vm295_vm6, %v405_v63 }
 0x2af   :  { %v485_v3 = vpop.f32.mrb[4].mxu1 }
 0x2b0   :  { %v486_v5 = vadd.f32 %v485_v3, %v415_v2  ;;  %v590_v6 = vpop.f32.mrb[5].mxu1 }
 0x2b2   :  { %490 = vst.msk [vmem:[#allocation3] sm:$0x1] %vm489_vm0, %v486_v5 }
 0x2b3   :  { %632 = shalt.err (!%p629_p4)
}
 0x2b4   :  { %s633_s18 = scalar_lea.hbm %s790_s8, 16 }
 0x2b5   :  { %p634_p5 = scmp.ne.s32.totalorder %s790_s8, %s633_s18  ;;  %p637_p6 = scmp.lt.u32.totalorder %s633_s18, %s790_s8 }
 0x2b7   :  { %p639_p7 = pnand %p637_p6, %p634_p5 }
 0x2b9   :  { %642 = shalt.err (!%p639_p7)
}
 0x2ba   :  { %500 = dma.vmem_to_hbm [thread:$0]  %s498_s15, 16, %s790_s8, [#allocation4]  }
 0x2bb   :  { %643 = dma.done.wait [#allocation4], 16  }
 0x2bc   :  { %644 = vsyncadd [#allocation4], 4294967280 }
 0x2bd   :  { %504 = vsyncpa [#allocation4], 1 }

</bundles_post_ra>
